<compile_context>
chip_gen: v6e
topology: v6e:2x2x1
jax: 0.10.0
libtpu: 0.0.40
codegen_flags: <defaults>
</compile_context>

<pallas_src>
import functools

import jax
import jax.numpy as jnp
from jax import lax
from jax.experimental import pallas as pl
from jax.experimental.pallas import tpu as pltpu


def _focal_loss_kernel(*refs, gamma, hw_valid, tile_cols, use_alpha, is_ragged):
    """One (batch n, pixel-column tile j) grid step.

    refs (use_alpha=True):  x_ref (1,C,TILE), t_ref (1,1,TILE), a_ref (C,1), out_ref (1,1,1,128)
    refs (use_alpha=False): x_ref (1,C,TILE), t_ref (1,1,TILE),              out_ref (1,1,1,128)
    """
    if use_alpha:
        x_ref, t_ref, a_ref, out_ref = refs
    else:
        x_ref, t_ref, out_ref = refs
        a_ref = None

    x = x_ref[0].astype(jnp.float32)        # (C, TILE), cast in-kernel
    t = t_ref[0]                            # (1, TILE) int32
    c = x.shape[0]

    # Numerically stable log-softmax pieces over the class (sublane) axis.
    # logp is never materialized: logpt = z[target] - lse.
    m = jnp.max(x, axis=0, keepdims=True)                        # (1, TILE)
    z = x - m                                                    # (C, TILE)
    lse = jnp.log(jnp.sum(jnp.exp(z), axis=0, keepdims=True))    # (1, TILE)

    cls = jax.lax.broadcasted_iota(jnp.int32, (c, tile_cols), 0)
    hit = cls == t                                               # (C, TILE) bool

    z_t = jnp.sum(jnp.where(hit, z, 0.0), axis=0, keepdims=True)  # (1, TILE)
    logpt = z_t - lse                                             # (1, TILE)

    if use_alpha:
        at = jnp.sum(jnp.where(hit, a_ref[...], 0.0), axis=0, keepdims=True)
        scaled = logpt * at                                       # (1, TILE)
    else:
        scaled = logpt

    # Focal modulation (gamma is a static Python number).
    if gamma == 0:
        loss = -scaled
    else:
        pt = jnp.exp(logpt)                  # pt from the *unscaled* logpt
        one_m_pt = 1.0 - pt
        if float(gamma) == int(gamma) and gamma > 0:
            mod = lax.integer_pow(one_m_pt, int(gamma))
        else:
            # Clamp: rounding can give pt slightly > 1 -> NaN under frac. pow.
            mod = jnp.maximum(one_m_pt, 0.0) ** float(gamma)
        loss = -(mod * scaled)

    if is_ragged:
        # Only the last column tile over-reads past HW; invalid columns carry
        # garbage (per-column only) and MUST be zeroed here.
        j = pl.program_id(1)
        col = jax.lax.broadcasted_iota(jnp.int32, (1, tile_cols), 1) + j * tile_cols
        loss = jnp.where(col < hw_valid, loss, 0.0)

    # Lane-dense unmasked store of this tile's partial sum (wrapper reads
    # element [..., 0, 0]); distinct block per grid point -> parallel grid.
    out_ref[...] = jnp.full(out_ref.shape, jnp.sum(loss), jnp.float32)


def _get_vmem_capacity_bytes():
    """Physical VMEM per TensorCore; conservative fallback if unqueryable."""
    try:
        cap = int(pltpu.get_tpu_info().vmem_capacity_bytes)
        if cap > 0:
            return cap
    except Exception:
        pass
    return 64 * 1024 * 1024     # v7x per-TC VMEM (smallest of the supported gens)


def _pick_tile_cols(hw, num_classes, itemsize, vmem_cap, max_tile_cols=None):
    """Largest lane-dense column tile whose full footprint fits the VMEM budget.

    Footprint per column:
      * 2x double-buffered native-dtype logits block : 2 * C * itemsize
      * ~6 live (C, TILE) f32 in-kernel intermediates: 24 * C
      * 2x double-buffered int32 target block        : 8
    """
    per_col = num_classes * (2 * max(int(itemsize), 1) + 24) + 8
    budget = min(vmem_cap // 3, 24 * 1024 * 1024)
    cap = budget // per_col
    cap = max(128, (cap // 128) * 128)
    cap = min(cap, 32768)
    if max_tile_cols is not None:
        cap = max(128, (int(max_tile_cols) // 128) * 128)
    if hw <= cap:
        return hw                            # single full-extent tile per batch item
    return cap


def focal_loss(x, target, gamma=0, alpha=None, size_average=True, max_tile_cols=None):
    """JAX/Pallas equivalent of FocalLoss.forward(input, target).

    NCHW (or any N,C,spatial...) logits are consumed class-major directly:
    x.reshape(N, C, -1) is a free reshape, so no transpose / pad / upcast copy
    of the logits is ever materialized in HBM (cast happens in-kernel).
    """
    if x.ndim > 2:
        n, c = x.shape[0], x.shape[1]
        x3 = x.reshape(n, c, -1)             # class-major, no data movement
    else:
        c = x.shape[1]
        n = 1
        x3 = x.T.reshape(1, c, -1)           # small 2D case: cheap transpose
    hw = x3.shape[2]
    rows = n * hw

    target3 = target.reshape(n, 1, hw).astype(jnp.int32)

    # Per-class alpha vector (None -> statically specialized "no weighting").
    use_alpha = alpha is not None
    if use_alpha:
        if isinstance(alpha, (float, int)):
            assert c == 2, "scalar alpha assumes binary classification (C == 2)"
            a = jnp.array([float(alpha), 1.0 - float(alpha)], jnp.float32)
        else:
            a = jnp.asarray(alpha, jnp.float32)
            assert a.shape == (c,), "alpha must have one entry per class"
        a = a.reshape(c, 1)

    vmem_cap = _get_vmem_capacity_bytes()
    tile_cols = _pick_tile_cols(hw, c, jnp.dtype(x.dtype).itemsize, vmem_cap,
                                max_tile_cols)
    n_j = pl.cdiv(hw, tile_cols)
    is_ragged = (hw % tile_cols) != 0

    # Only the tiny target array gets padded when the last tile is ragged;
    # the logits over-read is masked inside the kernel (loss mask).
    hw_pad = n_j * tile_cols
    if hw_pad != hw:
        target3 = jnp.pad(target3, ((0, 0), (0, 0), (0, hw_pad - hw)))

    kernel = functools.partial(
        _focal_loss_kernel, gamma=gamma, hw_valid=hw, tile_cols=tile_cols,
        use_alpha=use_alpha, is_ragged=is_ragged)

    in_specs = [
        pl.BlockSpec((1, c, tile_cols), lambda i, j: (i, 0, j)),
        pl.BlockSpec((1, 1, tile_cols), lambda i, j: (i, 0, j)),
    ]
    inputs = [x3, target3]
    if use_alpha:
        in_specs.append(pl.BlockSpec((c, 1), lambda i, j: (0, 0)))
        inputs.append(a)

    # Raise scoped VMEM above v5e's 16 MiB default so the large tiles fit on
    # every generation, while staying well inside physical VMEM.
    vmem_limit = min(vmem_cap // 2, 64 * 1024 * 1024)

    partials = pl.pallas_call(
        kernel,
        out_shape=jax.ShapeDtypeStruct((n, n_j, 1, 128), jnp.float32),
        grid_spec=pltpu.PrefetchScalarGridSpec(
            num_scalar_prefetch=0,
            grid=(n, n_j),
            in_specs=in_specs,
            out_specs=pl.BlockSpec((1, 1, 1, 128), lambda i, j: (i, j, 0, 0)),
        ),
        compiler_params=pltpu.CompilerParams(
            dimension_semantics=("parallel", "parallel"),
            vmem_limit_bytes=vmem_limit),
    )(*inputs)

    total = jnp.sum(partials[:, :, 0, 0])
    if size_average:
        return total / rows
    return total


def _focal_loss_ref(x, target, gamma=0, alpha=None, size_average=True):
    """Pure-JAX reference mirroring the PyTorch FocalLoss.forward."""
    if x.ndim > 2:
        n_, c_ = x.shape[0], x.shape[1]
        x = x.reshape(n_, c_, -1).transpose(0, 2, 1).reshape(-1, c_)
    x = x.astype(jnp.float32)
    target = target.reshape(-1).astype(jnp.int32)
    logp = jax.nn.log_softmax(x, axis=1)
    logpt = jnp.take_along_axis(logp, target[:, None], axis=1)[:, 0]
    pt = jnp.exp(logpt)
    if alpha is not None:
        if isinstance(alpha, (float, int)):
            a = jnp.array([float(alpha), 1.0 - float(alpha)], jnp.float32)
        else:
            a = jnp.asarray(alpha, jnp.float32)
        logpt = logpt * a[target]
    loss = -1.0 * (1.0 - pt) ** float(gamma) * logpt
    return loss.mean() if size_average else loss.sum()


if __name__ == "__main__":
    key = jax.random.PRNGKey(0)
    k1, k2, k3, k4 = jax.random.split(key, 4)

    # NCHW logits, 4 classes, small spatial size.
    N, C, H, W = 2, 4, 16, 16
    x = jax.random.normal(k1, (N, C, H, W), dtype=jnp.float32)
    target = jax.random.randint(k2, (N, H, W), 0, C, dtype=jnp.int32)

    # Default config: gamma=0, alpha=None, mean reduction (no-alpha, no-mask path).
    out0 = jax.block_until_ready(
        focal_loss(x, target, gamma=0, alpha=None, size_average=True))
    ref0 = _focal_loss_ref(x, target, gamma=0, alpha=None, size_average=True)
    assert jnp.allclose(out0, ref0, rtol=1e-5, atol=1e-4), (out0, ref0)

    # Weighted focal config: gamma=2, per-class alpha list, sum reduction.
    alpha = [0.1, 0.2, 0.3, 0.4]
    out1 = jax.block_until_ready(
        focal_loss(x, target, gamma=2, alpha=alpha, size_average=False))
    ref1 = _focal_loss_ref(x, target, gamma=2, alpha=alpha, size_average=False)
    assert jnp.allclose(out1, ref1, rtol=1e-5, atol=1e-4), (out1, ref1)

    # Multi-tile, evenly divisible columns, no alpha, focal gamma=2
    # (exercises the no-alpha specialization with the ragged mask compiled out).
    out1b = jax.block_until_ready(
        focal_loss(x, target, gamma=2, alpha=None, size_average=True,
                   max_tile_cols=128))
    ref1b = _focal_loss_ref(x, target, gamma=2, alpha=None, size_average=True)
    assert jnp.allclose(out1b, ref1b, rtol=1e-5, atol=1e-4), (out1b, ref1b)

    # bf16 logits (native-dtype DMA, in-kernel cast) + ragged column tiling:
    # HW = 15*20 = 300 with a forced 128-wide tile -> last tile is masked.
    N2, C2, H2, W2 = 2, 16, 15, 20
    alpha2 = [(i + 1) / 16.0 for i in range(C2)]
    xb = jax.random.normal(k3, (N2, C2, H2, W2), dtype=jnp.bfloat16)
    tb = jax.random.randint(k4, (N2, H2, W2), 0, C2, dtype=jnp.int32)
    out2 = jax.block_until_ready(
        focal_loss(xb, tb, gamma=2, alpha=alpha2, size_average=True,
                   max_tile_cols=128))
    ref2 = _focal_loss_ref(xb, tb, gamma=2, alpha=alpha2, size_average=True)
    assert jnp.allclose(out2, ref2, rtol=1e-5, atol=1e-4), (out2, ref2)

    print("KERNEL_OK")
</pallas_src>

<mosaic_0001>
module attributes {stable_mosaic.version = 11 : i64} {
  func.func @_focal_loss_kernel(%arg0: i32, %arg1: i32, %arg2: memref<1x4x256xf32, #tpu.memory_space<vmem>>, %arg3: memref<1x1x256xi32, #tpu.memory_space<vmem>>, %arg4: memref<1x1x1x128xf32, #tpu.memory_space<vmem>>) attributes {dimension_semantics = [#tpu.dimension_semantics<parallel>, #tpu.dimension_semantics<parallel>], iteration_bounds = array<i64: 2, 1>, scalar_prefetch = 0 : i64, scratch_operands = 0 : i64, tpu.core_type = #tpu.core_type<tc>, window_params = [{transform_indices = @transform_0, window_bounds = array<i64: 1, 4, 256>}, {transform_indices = @transform_1, window_bounds = array<i64: 1, 1, 256>}, {transform_indices = @transform_2, window_bounds = array<i64: 1, 1, 1, 128>}]} {
    %c0 = arith.constant 0 : index
    %c0_0 = arith.constant 0 : index
    %c0_1 = arith.constant 0 : index
    %0 = vector.load %arg2[%c0, %c0_0, %c0_1] : memref<1x4x256xf32, #tpu.memory_space<vmem>>, vector<1x4x256xf32>
    %1 = vector.shape_cast %0 : vector<1x4x256xf32> to vector<4x256xf32>
    %c0_2 = arith.constant 0 : index
    %c0_3 = arith.constant 0 : index
    %c0_4 = arith.constant 0 : index
    %2 = vector.load %arg3[%c0_2, %c0_3, %c0_4] : memref<1x1x256xi32, #tpu.memory_space<vmem>>, vector<1x1x256xi32>
    %3 = vector.shape_cast %2 : vector<1x1x256xi32> to vector<1x256xi32>
    %cst = arith.constant dense<0xFF800000> : vector<256xf32>
    %4 = vector.multi_reduction <maximumf>, %1, %cst [0] : vector<4x256xf32> to vector<256xf32>
    %5 = vector.shape_cast %4 : vector<256xf32> to vector<1x256xf32>
    %6 = vector.broadcast %5 : vector<1x256xf32> to vector<4x256xf32>
    %7 = arith.subf %1, %6 : vector<4x256xf32>
    %8 = math.exp %7 : vector<4x256xf32>
    %cst_5 = arith.constant dense<0.000000e+00> : vector<256xf32>
    %9 = vector.multi_reduction <add>, %8, %cst_5 [0] : vector<4x256xf32> to vector<256xf32>
    %10 = vector.shape_cast %9 : vector<256xf32> to vector<1x256xf32>
    %11 = math.log %10 : vector<1x256xf32>
    %12 = tpu.iota {dimensions = array<i32: 0>} : vector<4x256xi32>
    %13 = vector.broadcast %3 : vector<1x256xi32> to vector<4x256xi32>
    %14 = arith.cmpi eq, %12, %13 : vector<4x256xi32>
    %cst_6 = arith.constant 0.000000e+00 : f32
    %15 = vector.broadcast %cst_6 : f32 to vector<4x256xf32>
    %16 = arith.select %14, %7, %15 : vector<4x256xi1>, vector<4x256xf32>
    %cst_7 = arith.constant dense<0.000000e+00> : vector<256xf32>
    %17 = vector.multi_reduction <add>, %16, %cst_7 [0] : vector<4x256xf32> to vector<256xf32>
    %18 = vector.shape_cast %17 : vector<256xf32> to vector<1x256xf32>
    %19 = arith.subf %18, %11 : vector<1x256xf32>
    %cst_8 = arith.constant 0.000000e+00 : f32
    %20 = vector.broadcast %cst_8 : f32 to vector<1x256xf32>
    %21 = arith.subf %20, %19 : vector<1x256xf32>
    %22 = vector.shape_cast %21 : vector<1x256xf32> to vector<1x1x256xf32>
    %cst_9 = arith.constant dense<0.000000e+00> : vector<1xf32>
    %23 = vector.multi_reduction <add>, %22, %cst_9 [1, 2] : vector<1x1x256xf32> to vector<1xf32>
    %24 = vector.shape_cast %23 : vector<1xf32> to vector<1x1x1xf32>
    %25 = vector.extract %24[0, 0, 0] : f32 from vector<1x1x1xf32>
    %26 = vector.broadcast %25 : f32 to vector<1x1x1x128xf32>
    %c0_10 = arith.constant 0 : index
    %c0_11 = arith.constant 0 : index
    %c0_12 = arith.constant 0 : index
    %c0_13 = arith.constant 0 : index
    %27 = vector.load %arg4[%c0_10, %c0_11, %c0_12, %c0_13] : memref<1x1x1x128xf32, #tpu.memory_space<vmem>>, vector<1x1x1x128xf32>
    tpu.vector_store %arg4[%c0_10, %c0_11, %c0_12, %c0_13], %26 {strides = array<i32>} : memref<1x1x1x128xf32, #tpu.memory_space<vmem>>, vector<1x1x1x128xf32>,
    return
  }
  func.func @transform_0(%arg0: i32, %arg1: i32) -> (i32, i32, i32) {
    %c0_i32 = arith.constant 0 : i32
    %c0_i32_0 = arith.constant 0 : i32
    return %arg0, %c0_i32, %arg1 : i32, i32, i32
  }
  func.func @transform_1(%arg0: i32, %arg1: i32) -> (i32, i32, i32) {
    %c0_i32 = arith.constant 0 : i32
    %c0_i32_0 = arith.constant 0 : i32
    return %arg0, %c0_i32, %arg1 : i32, i32, i32
  }
  func.func @transform_2(%arg0: i32, %arg1: i32) -> (i32, i32, i32, i32) {
    %c0_i32 = arith.constant 0 : i32
    %c0_i32_0 = arith.constant 0 : i32
    %c0_i32_1 = arith.constant 0 : i32
    return %arg0, %arg1, %c0_i32, %c0_i32_0 : i32, i32, i32, i32
  }
}

</mosaic_0001>

<bundles_post_ra>
// kernel: tpu_custom_call.1
= control target key start
LH: loop header
LB: loop body
LE: loop exit
PB: predicated region body
PF: predicated region fallthrough
CT: control target
= control target key end

     0   :  { %7 = vsyncpa [#allocation3], 0  ;;  %s868_s0 = inlined_call_operand.hbm [shape: f32[2,4,256], index: 0, kind: input, shape index: {}]   ;;  %s869_s1 = inlined_call_operand.hbm [shape: s32[2,1,256], index: 1, kind: input, shape index: {}]   ;;  %s870_s2 = inlined_call_operand.hbm [shape: f32[2,1,1,128], index: 2, kind: output, shape index: {}]  }
   0x1   :  { %9 = vsyncpa [#allocation3 + $0x1], 0 }
   0x2   :  { %10 = vsyncpa [#allocation6], 0 }
   0x3   :  { %12 = vsyncpa [#allocation6 + $0x1], 0 }
   0x4   :  { %13 = vsyncpa [#allocation4], 0 }
   0x5   :  { %15 = vsyncpa [#allocation4 + $0x1], 0  ;;  %s691_s9 = smov 0   ;;  %s693_s10 = smov 0  }
   0x6   :  { %s695_s11 = smov 0   ;;  %s697_s12 = smov 0  }
   0x7   :  { %s699_s13 = smov 0   ;;  %s701_s14 = smov 0  }
   0x8 LB: > { %s437_s15 = sadd.s32 4294967295, %s671_s14   ;;  %s438_s16 = sadd.s32 4294967294, %s671_s14   ;;  %s671_s14 = sphi %s701_s14, %s21_s14   ;;  %s667_s13 = sphi %s699_s13, %s882_s13   ;;  %s663_s12 = sphi %s697_s12, %s881_s12   ;;  %s659_s11 = sphi %s695_s11, %s880_s11   ;;  %s655_s10 = sphi %s693_s10, %s879_s10   ;;  %s651_s9 = sphi %s691_s9, %s878_s9  }
   0x9   : > { %s33_s17 = sadd.s32 1, %s667_s13  ;;  %s42_s18 = sadd.s32 1, %s659_s11 }
   0xa   : > { %p35_p0 = scmp.ge.s32.totalorder %s33_s17, 2  ;;  %p49_p1 = scmp.ne.s32.totalorder %s659_s11, %s655_s10 }
   0xb   : > { %p50_p2 = scmp.eq.s32.totalorder %s671_s14, 0  ;;  %p55_p3 = scmp.ne.s32.totalorder %s655_s10, %s651_s9 }
   0xc   : > { %s884_s17 = smov (%p35_p0, %s33_s17), 0  ;;  %p56_p5 = scmp.eq.s32.totalorder %s437_s15, 0 }
   0xd   : > { %p732_p4 = por %p50_p2, %p49_p1  ;;  %s37_s20 = ssub.s32 %s667_s13, %s884_s17 }
   0xe   : > { %p109_p6 = scmp.eq.s32.totalorder %s437_s15, 1  ;;  %p40_p7 = scmp.eq.s32.totalorder %s37_s20, 0 }
   0xf   : > { %p738_p8 = por %p56_p5, %p55_p3  ;;  %p115_p10 = scmp.eq.s32.totalorder %s438_s16, 1 }
  0x10   : > { %p742_p9 = por %p109_p6, %p49_p1  ;;  %p474_p13 = scmp.lt.s32.totalorder %s671_s14, 2 }
  0x11   : > { %s747_s23 = scalar_select %p40_p7, %s659_s11, %s42_s18  }
  0x12   : > { %p749_p11 = por %p115_p10, %p55_p3  ;;  %s756_s25 = sand.u32 1, %s659_s11  }
  0x13   : > { %s441_s26 = sshll.u32 %s756_s25, 3  ;;  %s453_s27 = sshll.u32 %s667_s13, 7 }
  0x14   : > { %s147_s30 = scalar_lea.hbm %s868_s0, %s453_s27  ;;  %s139_s3 = scalar_lea.vmem [#allocation2], %s441_s26 }
  0x15   : > { %s149_s4 = sshll.u32 %s139_s3, 4  ;;  %p765_p0 = pnand %p474_p13, %p732_p4  ;;  %s150_s4 = int_to_ptr.vmem [resolvable:$true] %s149_s4 }
  0x16   : > { %p447_p1 = scmp.ge.s32.totalorder %s671_s14, 1  ;;  %p175_p2 = scmp.lt.s32.totalorder %s671_s14, 3 }
  0x17   : > { %s136_s6 = scalar_lea.sflag [#allocation3], %s756_s25  ;;  %p533_p3 = pneg %p765_p0 }
  0x18   : > { %s544_s7 = scalar_lea.vmem %s150_s4, 128  ;;  %s673_s8 = smov [#allocation2]  }
  0x19   : > { %p545_p5 = scmp.ne.s32.totalorder %s150_s4, %s544_s7  ;;  %s549_s15 = sshll.u32 %s673_s8, 4  ;;  %s550_s15 = int_to_ptr.vmem [resolvable:$false] %s549_s15 }
  0x1a   : > { %s551_s16 = scalar_lea.vmem %s550_s15, 256  ;;  %p552_p4 = scmp.lt.s32.totalorder %s150_s4, %s550_s15 }
  0x1b   : > { %p547_p6 = pnand %p545_p5, %p533_p3  ;;  %p553_p10 = scmp.lt.s32.totalorder %s551_s16, %s544_s7 }
  0x1d   : > { %p548_p7 = pneg %p547_p6  ;;  %p554_p13 = por %p553_p10, %p552_p4 }
  0x1f   : > { %p555_p12 = pnand %p554_p13, %p548_p7 }
  0x21   : > { %558 = shalt.err (!%p555_p12)
}
  0x22   : > { %466 = dma.hbm_to_vmem [thread:$0]  (!%p765_p0), %s147_s30, 128, %s150_s4, %s136_s6  }
  0x23   : > { %p783_p5 = pnand %p447_p1, %p175_p2  ;;  %s444_s19 = sshll.u32 %s756_s25, 1 }
  0x24   : > { %s454_s20 = sshll.u32 %s667_s13, 5  ;;  %s160_s29 = scalar_lea.vmem [#allocation5], %s444_s19 }
  0x25   : > { %s168_s28 = scalar_lea.hbm %s869_s1, %s454_s20  ;;  %s170_s3 = sshll.u32 %s160_s29, 4  ;;  %s171_s3 = int_to_ptr.vmem [resolvable:$true] %s170_s3 }
  0x26   : > { %s157_s7 = scalar_lea.sflag [#allocation6], %s756_s25  ;;  %s572_s8 = scalar_lea.vmem %s171_s3, 32 }
  0x27   : > { %p573_p12 = scmp.ne.s32.totalorder %s171_s3, %s572_s8  ;;  %s674_s30 = smov [#allocation5]  }
  0x28   : > { %s577_s4 = sshll.u32 %s674_s30, 4  ;;  %s578_s4 = int_to_ptr.vmem [resolvable:$false] %s577_s4 }
  0x29   : > { %p575_p6 = pnand %p573_p12, %p533_p3  ;;  %s579_s6 = scalar_lea.vmem %s578_s4, 64 }
  0x2a   : > { %p580_p1 = scmp.lt.s32.totalorder %s171_s3, %s578_s4  ;;  %p581_p2 = scmp.lt.s32.totalorder %s579_s6, %s572_s8 }
  0x2b   : > { %p576_p7 = pneg %p575_p6 }
  0x2c   : > { %p582_p4 = por %p581_p2, %p580_p1 }
  0x2e   : > { %p583_p10 = pnand %p582_p4, %p576_p7 }
  0x30   : > { %586 = shalt.err (!%p583_p10)
}
  0x31   : > { %469 = dma.hbm_to_vmem [thread:$0]  (!%p765_p0), %s168_s28, 32, %s171_s3, %s157_s7  }
  0x32   : > { %179 = sbr.rel (%p783_p5) target bundleno = 347 (0x15b), region = 28  ;;  %s801_s25 = sand.u32 (!%p783_p5), 1, %s655_s10  }
  0x33   : > { %s448_s15 = sshll.u32 (!%p783_p5), %s801_s25, 3  ;;  %s182_s16 = scalar_lea.sflag (!%p783_p5), [#allocation3], %s801_s25 }
  0x34   : > { %s185_s19 = scalar_lea.vmem (!%p783_p5), [#allocation2], %s448_s15 }
  0x37   : > { %638 = dma.done.wait (%p738_p8), %s182_s16, 128  }
  0x38   : > { %640 = vsyncadd (%p738_p8), %s182_s16, 4294967168  ;;  %s449_s5 = sshll.u32 %s801_s25, 1  ;;  %s191_s18 = scalar_lea.sflag [#allocation6], %s801_s25 }
  0x39   : > { %s194_s20 = scalar_lea.vmem [#allocation5], %s449_s5 }
  0x3a   : > { %642 = dma.done.wait (%p738_p8), %s191_s18, 32  }
  0x3b   : > { %644 = vsyncadd (%p738_p8), %s191_s18, 4294967264  ;;  %vm226_vm0 = vcmask 1043456   ;;  %v221_v0 = vld [vmem:[%s185_s19] sm:$0xff]  ;;  %v269_v17 = vlaneseq  ;;  %v222_v22 = vld [vmem:[%s194_s20] sm:$0x3]  ;;  %vm304_vm3 = vcmask 1040384  }
  0x3c   : > { %v224_v1 = vcombine.high %v221_v0, %v221_v0  ;;  %v227_v2 = vsel %vm226_vm0, %v221_v0, -inf  ;;  %s218_s21 = scalar_lea.vmem [#allocation7], %s801_s25  ;;  %s450_s27 = sshll.u32 %s663_s12, 4 }
  0x3d   : > { %v228_v3 = vrot.slane %v227_v2, 4  ;;  %v270_v20 = vshrl.u32 %v269_v17, 7  ;;  %s333_s26 = sshll.u32 %s218_s21, 4  ;;  %s331_s7 = scalar_lea.hbm %s870_s2, %s450_s27  ;;  %s823_s26 = int_to_ptr.vmem [resolvable:$true] %s333_s26 }
  0x3e   : > { %v234_v4 = vsel %vm226_vm0, %v224_v1, -inf  ;;  %s320_s8 = scalar_lea.sflag [#allocation4], %s801_s25  ;;  %s587_s30 = scalar_lea.vmem %s823_s26, 16 }
  0x3f   : > { %v229_v5 = vmax.f32 %v227_v2, %v228_v3  ;;  %v235_v6 = vrot.slane %v234_v4, 4  ;;  %v273_v21 = vsub.s32 0, %v270_v20  ;;  %v277_v23 = vsub.s32 1, %v270_v20  ;;  %p588_p8 = scmp.ne.s32.totalorder %s823_s26, %s587_s30  ;;  %s675_s4 = smov [#allocation7]  }
  0x40   : > { %s591_s12 = sshll.u32 %s675_s4, 4  ;;  %s592_s12 = int_to_ptr.vmem [resolvable:$false] %s591_s12 }
  0x41   : > { %v230_v7 = vrot.slane %v229_v5, 2  ;;  %v236_v8 = vmax.f32 %v234_v4, %v235_v6  ;;  %v274_v24 = vrot.slane %v222_v22, %v273_v21  ;;  %v278_v25 = vrot.slane %v222_v22, %v277_v23  ;;  %p589_p0 = pnand %p588_p8, %p742_p9  ;;  %s593_s6 = scalar_lea.vmem %s592_s12, 32 }
  0x42   : > { %p594_p13 = scmp.lt.s32.totalorder %s823_s26, %s592_s12  ;;  %p595_p5 = scmp.lt.s32.totalorder %s593_s6, %s587_s30 }
  0x43   : > { %v231_v9 = vmax.f32 %v229_v5, %v230_v7  ;;  %v237_v10 = vrot.slane %v236_v8, 2  ;;  %vm279_vm1 = vcmp.eq.s32.totalorder %v270_v20, %v274_v24  ;;  %vm280_vm2 = vcmp.eq.s32.totalorder %v270_v20, %v278_v25  ;;  %p590_p3 = pneg %p589_p0 }
  0x44   : > { %p596_p12 = por %p595_p5, %p594_p13 }
  0x45   : > { %v232_v11 = vrot.slane %v231_v9, 1  ;;  %v238_v12 = vmax.f32 %v236_v8, %v237_v10 }
  0x46   : > { %p597_p6 = pnand %p596_p12, %p590_p3 }
  0x47   : > { %v233_v13 = vmax.f32 %v231_v9, %v232_v11  ;;  %v239_v14 = vrot.slane %v238_v12, 1 }
  0x49   : > { %v240_v15 = vmax.f32 %v238_v12, %v239_v14 }
  0x4b   : > { %v243_v16 = vcombine.low %v233_v13, %v240_v15 }
  0x4d   : > { %v245_v18 = vsub.f32 %v221_v0, %v243_v16 }
  0x4f   : > { %v246_v19 = vmul.f32 1.442695, %v245_v18  ;;  %v282_v26 = vcombine.high %v245_v18, %v245_v18  ;;  %v284_v28 = vsel %vm279_vm1, %v245_v18, 0.0 }
  0x50   : > { %v286_v34 = vsel %vm226_vm0, %v284_v28, 0.0 }
  0x51   : > { %525 = vpow2.f32 %v246_v19  ;;  %v285_v32 = vsel %vm280_vm2, %v282_v26, 0.0  ;;  %v287_v40 = vrot.slane %v286_v34, 4 }
  0x52   : > { %v293_v37 = vsel %vm226_vm0, %v285_v32, 0.0 }
  0x53   : > { %v294_v43 = vrot.slane %v293_v37, 4  ;;  %v288_v46 = vadd.f32 %v287_v40, %v286_v34 }
  0x55   : > { %v295_v49 = vadd.f32 %v294_v43, %v293_v37  ;;  %v289_v51 = vrot.slane %v288_v46, 2 }
  0x57   : > { %v296_v52 = vrot.slane %v295_v49, 2  ;;  %v290_v53 = vadd.f32 %v289_v51, %v288_v46 }
  0x59   : > { %v297_v54 = vadd.f32 %v296_v52, %v295_v49  ;;  %v291_v55 = vrot.slane %v290_v53, 1 }
  0x5b   : > { %v298_v56 = vrot.slane %v297_v54, 1  ;;  %v292_v57 = vadd.f32 %v291_v55, %v290_v53 }
  0x5d   : > { %v299_v60 = vadd.f32 %v298_v56, %v297_v54 }
  0x5e   : > { %v526_v27 = vpop.eup %525 }
  0x5f   : > { %v249_v29 = vcombine.high %v526_v27, %v526_v27  ;;  %v251_v30 = vsel %vm226_vm0, %v526_v27, 0.0 }
  0x60   : > { %v252_v31 = vrot.slane %v251_v30, 4 }
  0x61   : > { %v258_v33 = vsel %vm226_vm0, %v249_v29, 0.0 }
  0x62   : > { %v253_v35 = vadd.f32 %v252_v31, %v251_v30  ;;  %v259_v36 = vrot.slane %v258_v33, 4 }
  0x64   : > { %v254_v38 = vrot.slane %v253_v35, 2  ;;  %v260_v39 = vadd.f32 %v259_v36, %v258_v33 }
  0x66   : > { %v255_v41 = vadd.f32 %v254_v38, %v253_v35  ;;  %v261_v42 = vrot.slane %v260_v39, 2 }
  0x68   : > { %v256_v44 = vrot.slane %v255_v41, 1  ;;  %v262_v45 = vadd.f32 %v261_v42, %v260_v39 }
  0x6a   : > { %v257_v47 = vadd.f32 %v256_v44, %v255_v41  ;;  %v263_v48 = vrot.slane %v262_v45, 1 }
  0x6c   : > { %v264_v50 = vadd.f32 %v263_v48, %v262_v45  ;;  %527 = vlog2.f32 %v257_v47 }
  0x6e   : > { %529 = vlog2.f32 %v264_v50 }
  0x79   : > { %v528_v58 = vpop.eup %527 }
  0x7a   : > { %v266_v59 = vmul.f32 0.6931472, %v528_v58 }
  0x7b   : > { %v530_v61 = vpop.eup %529 }
  0x7c   : > { %v268_v62 = vmul.f32 0.6931472, %v530_v61  ;;  %v300_v63 = vsub.f32 %v292_v57, %v266_v59 }
  0x7e   : > { %v301_v0 = vsub.f32 %v299_v60, %v268_v62  ;;  %v302_v1 = vsub.f32 0.0, %v300_v63 }
  0x80   : > { %v303_v2 = vsub.f32 0.0, %v301_v0  ;;  %v305_v3 = vsel %vm304_vm3, %v302_v1, 0.0 }
  0x82   : > { %v306_v4 = vsel %vm304_vm3, %v303_v2, 0.0 }
  0x83   : > { %v307_v5 = vadd.f32 %v306_v4, %v305_v3 }
  0x85   : > { %308 = vadd.xlane.f32.xlu0 %v307_v5 }
 0x10e   : > { %v309_v6 = vpop.xlane.xlu0 %308 }
 0x10f   : > { %v310_v7 = vrot.slane %v309_v6, 4 }
 0x111   : > { %v311_v8 = vadd.f32 %v310_v7, %v309_v6 }
 0x113   : > { %v312_v9 = vrot.slane %v311_v8, 2 }
 0x115   : > { %v313_v10 = vadd.f32 %v312_v9, %v311_v8 }
 0x117   : > { %v314_v11 = vrot.slane %v313_v10, 1 }
 0x119   : > { %v315_v12 = vadd.f32 %v314_v11, %v313_v10 }
 0x11b   : > { %455 = vpush %v315_v12 }
 0x14c   : > { %s456_s28 = spop %455 }
 0x14d   : > { %v317_v13 = vstv %s456_s28 }
 0x14e   : > { %318 = vst [vmem:[%s218_s21] sm:$0x1] %v317_v13 }
 0x14f   : > { %600 = shalt.err (!%p597_p6)
}
 0x150   : > { %s601_s15 = scalar_lea.hbm %s331_s7, 16  ;;  %s605_s19 = scalar_lea.hbm %s870_s2, 32 }
 0x151   : > { %p602_p7 = scmp.ne.s32.totalorder %s331_s7, %s601_s15  ;;  %p606_p4 = scmp.lt.s32.totalorder %s331_s7, %s870_s2 }
 0x152   : > { %p607_p10 = scmp.lt.s32.totalorder %s605_s19, %s601_s15 }
 0x153   : > { %p603_p1 = pnand %p602_p7, %p742_p9 }
 0x154   : > { %p608_p8 = por %p607_p10, %p606_p4 }
 0x155   : > { %p604_p2 = pneg %p603_p1 }
 0x157   : > { %p609_p0 = pnand %p608_p8, %p604_p2 }
 0x159   : > { %612 = shalt.err (!%p609_p0)
}
 0x15a   : > { %461 = dma.vmem_to_hbm [thread:$0]  (%p742_p9), %s823_s26, 16, %s331_s7, %s320_s8  }
 0x15b PF: > { %s345_s20 = sand.u32 1, %s651_s9   ;;  %p877_p3 = scmp.ge.s32.totalorder %s671_s14, 2 }
 0x15c   : > { %s346_s21 = scalar_lea.sflag [#allocation4], %s345_s20 }
 0x15d   : > { %p471_p13 = pnand %p877_p3, %p749_p11 }
 0x15f   : > { %p472_p5 = pneg %p471_p13 }
 0x161   : > { %646 = dma.done.wait (%p472_p5), %s346_s21, 16  }
 0x162   : > { %648 = vsyncadd (%p472_p5), %s346_s21, 4294967280  ;;  %s21_s14 = sadd.s32 1, %s671_s14   ;;  %s878_s9 = smov %s655_s10 }
 0x163   : > { %p18_p12 = scmp.ge.s32.totalorder %s21_s14, 4   ;;  %s879_s10 = smov %s659_s11 }
 0x164   : > { %s880_s11 = smov %s747_s23  ;;  %s881_s12 = smov %s667_s13 }
 0x165   : > { %s882_s13 = smov %s884_s17  ;;  %20 = sbr.rel (!%p18_p12) target bundleno = 8 (0x8), region = 86 }
 0x16a   :  { %350 = vsyncpa [#allocation3], 1 }
 0x16b   :  { %352 = vsyncpa [#allocation3 + $0x1], 1 }
 0x16c   :  { %353 = vsyncpa [#allocation6], 1 }
 0x16d   :  { %355 = vsyncpa [#allocation6 + $0x1], 1 }
 0x16e   :  { %356 = vsyncpa [#allocation4], 1 }
 0x16f   :  { %358 = vsyncpa [#allocation4 + $0x1], 1 }

</bundles_post_ra>
